<compile_context>
chip_gen: v5e
topology: v5e:2x2
jax: 0.10.0
libtpu: 0.0.40
codegen_flags: <defaults>
</compile_context>

<pallas_src>
import functools

import jax
import jax.numpy as jnp
from jax.experimental import pallas as pl
from jax.experimental.pallas import tpu as pltpu

INPUT_SIZE = 30
HIDDEN_SIZE1 = 20
HIDDEN_SIZE2 = 20
OUTPUT_SIZE = 2

H_PAD = 24      # hidden widths padded 20 -> 24 (8-sublane aligned, exact zeros)
MAX_TB = 32768  # keeps double-buffered blocks well inside v7x's 32 MiB scoped VMEM


def _mlp_kernel(xT_ref, w1_ref, b1_ref, w2_ref, b2_ref, w3_ref, b3_ref, o_ref, *, act_dtype):
    # One batch tile per grid step: xT_ref is (INPUT_SIZE, tb), batch on the lane dim.
    # All matmuls accumulate in f32 on the MXU; bias add + tanh run in f32 by default
    # (v5e-safe), optionally bf16 (act_dtype) on v6e/v7x if the EUP slot binds.
    w1 = w1_ref[...]
    w2 = w2_ref[...]
    w3 = w3_ref[...]
    z1 = jnp.dot(w1, xT_ref[...], preferred_element_type=jnp.float32) + b1_ref[...]
    h1 = jnp.tanh(z1.astype(act_dtype)).astype(w2.dtype)
    z2 = jnp.dot(w2, h1, preferred_element_type=jnp.float32) + b2_ref[...]
    h2 = jnp.tanh(z2.astype(act_dtype)).astype(w3.dtype)
    out = jnp.dot(w3, h2, preferred_element_type=jnp.float32) + b3_ref[...]
    o_ref[...] = out.astype(o_ref.dtype)  # (OUTPUT_SIZE, tb): lane-dense store


def _pad_params(params, stream_dtype):
    """Pad hidden dims 20->24 with exact zeros (tanh(0)=0, zero rows/cols contribute 0)."""
    w1 = jnp.zeros((H_PAD, INPUT_SIZE), stream_dtype)
    w1 = w1.at[:HIDDEN_SIZE1, :].set(params["w1"].astype(stream_dtype))
    b1 = jnp.zeros((H_PAD, 1), jnp.float32).at[:HIDDEN_SIZE1, 0].set(params["b1"])

    w2 = jnp.zeros((H_PAD, H_PAD), stream_dtype)
    w2 = w2.at[:HIDDEN_SIZE2, :HIDDEN_SIZE1].set(params["w2"].astype(stream_dtype))
    b2 = jnp.zeros((H_PAD, 1), jnp.float32).at[:HIDDEN_SIZE2, 0].set(params["b2"])

    w3 = jnp.zeros((OUTPUT_SIZE, H_PAD), stream_dtype)
    w3 = w3.at[:, :HIDDEN_SIZE2].set(params["w3"].astype(stream_dtype))
    b3 = params["b3"].reshape(OUTPUT_SIZE, 1).astype(jnp.float32)
    return w1, b1, w2, b2, w3, b3


def _forward_feature_major(xT, params, *, tb, stream_dtype, act_dtype):
    """Core path.  xT: (INPUT_SIZE, B) feature-major.  Returns (OUTPUT_SIZE, B) f32."""
    feat, batch = xT.shape
    assert feat == INPUT_SIZE

    # Minimal lane alignment only (fuses with transpose/cast under jit); the grid uses
    # cdiv so the last block may be partial -- garbage lanes are sliced off below.
    b_pad = pl.cdiv(batch, 128) * 128
    xT = xT.astype(stream_dtype)
    if b_pad != batch:
        xT = jnp.pad(xT, ((0, 0), (0, b_pad - batch)))

    # Tile clamping: multiple of 128, capped for v7x VMEM, and split into >= 2 balanced
    # steps when possible so dimension_semantics=("parallel",) can use both v7x TCs.
    tb = max(128, (int(tb) // 128) * 128)
    tb = min(tb, MAX_TB)
    if b_pad >= 256:
        half = pl.cdiv(pl.cdiv(b_pad, 2), 128) * 128
        tb = min(tb, half)
    tb = min(tb, b_pad)
    grid = (pl.cdiv(b_pad, tb),)

    w1, b1, w2, b2, w3, b3 = _pad_params(params, stream_dtype)

    itemsize = jnp.dtype(stream_dtype).itemsize
    w_bytes = (H_PAD * INPUT_SIZE + H_PAD * H_PAD + OUTPUT_SIZE * H_PAD) * itemsize \
        + (2 * H_PAD + OUTPUT_SIZE) * 4
    cost = pl.CostEstimate(
        flops=2 * b_pad * (INPUT_SIZE * H_PAD + H_PAD * H_PAD + H_PAD * OUTPUT_SIZE),
        transcendentals=2 * H_PAD * b_pad,
        bytes_accessed=b_pad * INPUT_SIZE * itemsize + b_pad * OUTPUT_SIZE * 4 + w_bytes,
    )

    def resident(shape):  # weights/biases: same block every step -> stay VMEM-resident
        return pl.BlockSpec(shape, lambda i: (0, 0))

    oT = pl.pallas_call(
        functools.partial(_mlp_kernel, act_dtype=act_dtype),
        out_shape=jax.ShapeDtypeStruct((OUTPUT_SIZE, b_pad), jnp.float32),
        grid=grid,
        in_specs=[
            pl.BlockSpec((INPUT_SIZE, tb), lambda i: (0, i)),  # streamed + pipelined
            resident((H_PAD, INPUT_SIZE)),
            resident((H_PAD, 1)),
            resident((H_PAD, H_PAD)),
            resident((H_PAD, 1)),
            resident((OUTPUT_SIZE, H_PAD)),
            resident((OUTPUT_SIZE, 1)),
        ],
        out_specs=pl.BlockSpec((OUTPUT_SIZE, tb), lambda i: (0, i)),
        compiler_params=pltpu.CompilerParams(
            dimension_semantics=("parallel",),  # batch tiles independent -> v7x 2-TC split
        ),
        cost_estimate=cost,
    )(xT, w1, b1, w2, b2, w3, b3)

    return oT[:, :batch]


@functools.partial(jax.jit, static_argnames=("tb", "stream_dtype", "bf16_tanh"))
def mein_netz_forward(x, params, *, tb=MAX_TB, stream_dtype=jnp.bfloat16, bf16_tanh=False):
    """Drop-in forward: x is (B, INPUT_SIZE) batch-major, returns (B, OUTPUT_SIZE) f32.

    Under jit the transpose/pad/cast into feature-major layout and the final
    slice/transpose fuse with neighbouring ops (single HBM pass each).
    stream_dtype=bfloat16 (default) halves the dominant HBM read; accumulation stays
    f32.  Use stream_dtype=float32 for the exact mode.  bf16_tanh=True additionally
    runs tanh in bf16 (v6e/v7x only; keep False on v5e).
    """
    act_dtype = stream_dtype if bf16_tanh else jnp.float32
    oT = _forward_feature_major(x.T, params, tb=tb, stream_dtype=stream_dtype,
                                act_dtype=act_dtype)
    return oT.T


@functools.partial(jax.jit, static_argnames=("tb", "stream_dtype", "bf16_tanh"))
def mein_netz_forward_feature_major(xT, params, *, tb=MAX_TB, stream_dtype=jnp.bfloat16,
                                    bf16_tanh=False):
    """1x-roofline entry: xT already feature-major (INPUT_SIZE, B); returns (OUTPUT_SIZE, B)."""
    act_dtype = stream_dtype if bf16_tanh else jnp.float32
    return _forward_feature_major(xT, params, tb=tb, stream_dtype=stream_dtype,
                                  act_dtype=act_dtype)


def init_params(key):
    """PyTorch nn.Linear-style init: U(-1/sqrt(fan_in), 1/sqrt(fan_in)), (out, in) weights."""

    def linear(key, fan_in, fan_out):
        kw, kb = jax.random.split(key)
        bound = 1.0 / jnp.sqrt(float(fan_in))
        w = jax.random.uniform(kw, (fan_out, fan_in), jnp.float32, -bound, bound)
        b = jax.random.uniform(kb, (fan_out,), jnp.float32, -bound, bound)
        return w, b

    k1, k2, k3 = jax.random.split(key, 3)
    w1, b1 = linear(k1, INPUT_SIZE, HIDDEN_SIZE1)
    w2, b2 = linear(k2, HIDDEN_SIZE1, HIDDEN_SIZE2)
    w3, b3 = linear(k3, HIDDEN_SIZE2, OUTPUT_SIZE)
    return {"w1": w1, "b1": b1, "w2": w2, "b2": b2, "w3": w3, "b3": b3}


def reference_forward(x, p):
    h1 = jnp.tanh(x @ p["w1"].T + p["b1"])
    h2 = jnp.tanh(h1 @ p["w2"].T + p["b2"])
    return h2 @ p["w3"].T + p["b3"]


if __name__ == "__main__":
    key = jax.random.PRNGKey(0)
    kx, kp = jax.random.split(key)
    params = init_params(kp)

    # Small batch, exact f32 path (single grid step).
    B = 8
    x = jax.random.normal(kx, (B, INPUT_SIZE), jnp.float32)
    ref = reference_forward(x, params)

    out_f32 = mein_netz_forward(x, params, stream_dtype=jnp.float32)
    jax.block_until_ready(out_f32)
    assert out_f32.shape == (B, OUTPUT_SIZE)
    assert jnp.allclose(out_f32, ref, atol=1e-5, rtol=1e-5)

    # Default bf16-streaming path (f32 accumulation + f32 tanh): precision mode, looser tol.
    out_bf16 = mein_netz_forward(x, params)
    jax.block_until_ready(out_bf16)
    assert jnp.allclose(out_bf16, ref, atol=5e-2, rtol=5e-2)

    # Optional bf16 tanh (v6e/v7x EUP relief); even looser tolerance.
    out_bf16t = mein_netz_forward(x, params, bf16_tanh=True)
    jax.block_until_ready(out_bf16t)
    assert jnp.allclose(out_bf16t, ref, atol=1e-1, rtol=1e-1)

    # Multi-tile batch with a partial last block (exercises cdiv grid + :B slicing), exact.
    B2 = 300
    x2 = jax.random.normal(kx, (B2, INPUT_SIZE), jnp.float32)
    out2 = mein_netz_forward(x2, params, tb=128, stream_dtype=jnp.float32)
    jax.block_until_ready(out2)
    ref2 = reference_forward(x2, params)
    assert out2.shape == (B2, OUTPUT_SIZE)
    assert jnp.allclose(out2, ref2, atol=1e-5, rtol=1e-5)

    # Feature-major entry point (no transpose anywhere), exact.
    outT = mein_netz_forward_feature_major(x2.T, params, stream_dtype=jnp.float32)
    jax.block_until_ready(outT)
    assert outT.shape == (OUTPUT_SIZE, B2)
    assert jnp.allclose(outT.T, ref2, atol=1e-5, rtol=1e-5)

    print("KERNEL_OK")
</pallas_src>

<mosaic_0001>
module attributes {stable_mosaic.version = 11 : i64} {
  func.func @_mlp_kernel(%arg0: i32, %arg1: memref<30x128xf32, #tpu.memory_space<vmem>>, %arg2: memref<24x30xf32, #tpu.memory_space<vmem>>, %arg3: memref<24x1xf32, #tpu.memory_space<vmem>>, %arg4: memref<24x24xf32, #tpu.memory_space<vmem>>, %arg5: memref<24x1xf32, #tpu.memory_space<vmem>>, %arg6: memref<2x24xf32, #tpu.memory_space<vmem>>, %arg7: memref<2x1xf32, #tpu.memory_space<vmem>>, %arg8: memref<2x128xf32, #tpu.memory_space<vmem>>) attributes {dimension_semantics = [#tpu.dimension_semantics<parallel>], iteration_bounds = array<i64: 1>, scalar_prefetch = 0 : i64, scratch_operands = 0 : i64, tpu.core_type = #tpu.core_type<tc>, window_params = [{transform_indices = @transform_0, window_bounds = array<i64: 30, 128>}, {pipeline_mode = #tpu.pipeline_mode<synchronous>, transform_indices = @transform_1, window_bounds = array<i64: 24, 30>}, {pipeline_mode = #tpu.pipeline_mode<synchronous>, transform_indices = @transform_2, window_bounds = array<i64: 24, 1>}, {pipeline_mode = #tpu.pipeline_mode<synchronous>, transform_indices = @transform_3, window_bounds = array<i64: 24, 24>}, {pipeline_mode = #tpu.pipeline_mode<synchronous>, transform_indices = @transform_4, window_bounds = array<i64: 24, 1>}, {pipeline_mode = #tpu.pipeline_mode<synchronous>, transform_indices = @transform_5, window_bounds = array<i64: 2, 24>}, {pipeline_mode = #tpu.pipeline_mode<synchronous>, transform_indices = @transform_6, window_bounds = array<i64: 2, 1>}, {transform_indices = @transform_7, window_bounds = array<i64: 2, 128>}]} {
    %c0 = arith.constant 0 : index
    %c0_0 = arith.constant 0 : index
    %0 = vector.load %arg2[%c0, %c0_0] : memref<24x30xf32, #tpu.memory_space<vmem>>, vector<24x30xf32>
    %c0_1 = arith.constant 0 : index
    %c0_2 = arith.constant 0 : index
    %1 = vector.load %arg4[%c0_1, %c0_2] : memref<24x24xf32, #tpu.memory_space<vmem>>, vector<24x24xf32>
    %c0_3 = arith.constant 0 : index
    %c0_4 = arith.constant 0 : index
    %2 = vector.load %arg6[%c0_3, %c0_4] : memref<2x24xf32, #tpu.memory_space<vmem>>, vector<2x24xf32>
    %c0_5 = arith.constant 0 : index
    %c0_6 = arith.constant 0 : index
    %3 = vector.load %arg1[%c0_5, %c0_6] : memref<30x128xf32, #tpu.memory_space<vmem>>, vector<30x128xf32>
    %cst = arith.constant dense<0.000000e+00> : vector<24x128xf32>
    %4 = tpu.matmul %0, %3, %cst {dimension_numbers = #tpu.dot_dimension_numbers<[1], [0], [0], [1], [0, 0, 1, 1], [], []>} : vector<24x30xf32>, vector<30x128xf32>, vector<24x128xf32> -> vector<24x128xf32>
    %c0_7 = arith.constant 0 : index
    %c0_8 = arith.constant 0 : index
    %5 = vector.load %arg3[%c0_7, %c0_8] : memref<24x1xf32, #tpu.memory_space<vmem>>, vector<24x1xf32>
    %6 = vector.broadcast %5 : vector<24x1xf32> to vector<24x128xf32>
    %7 = arith.addf %4, %6 : vector<24x128xf32>
    %8 = math.tanh %7 : vector<24x128xf32>
    %cst_9 = arith.constant dense<0.000000e+00> : vector<24x128xf32>
    %9 = tpu.matmul %1, %8, %cst_9 {dimension_numbers = #tpu.dot_dimension_numbers<[1], [0], [0], [1], [0, 0, 1, 1], [], []>} : vector<24x24xf32>, vector<24x128xf32>, vector<24x128xf32> -> vector<24x128xf32>
    %c0_10 = arith.constant 0 : index
    %c0_11 = arith.constant 0 : index
    %10 = vector.load %arg5[%c0_10, %c0_11] : memref<24x1xf32, #tpu.memory_space<vmem>>, vector<24x1xf32>
    %11 = vector.broadcast %10 : vector<24x1xf32> to vector<24x128xf32>
    %12 = arith.addf %9, %11 : vector<24x128xf32>
    %13 = math.tanh %12 : vector<24x128xf32>
    %cst_12 = arith.constant dense<0.000000e+00> : vector<2x128xf32>
    %14 = tpu.matmul %2, %13, %cst_12 {dimension_numbers = #tpu.dot_dimension_numbers<[1], [0], [0], [1], [0, 0, 1, 1], [], []>} : vector<2x24xf32>, vector<24x128xf32>, vector<2x128xf32> -> vector<2x128xf32>
    %c0_13 = arith.constant 0 : index
    %c0_14 = arith.constant 0 : index
    %15 = vector.load %arg7[%c0_13, %c0_14] : memref<2x1xf32, #tpu.memory_space<vmem>>, vector<2x1xf32>
    %16 = vector.broadcast %15 : vector<2x1xf32> to vector<2x128xf32>
    %17 = arith.addf %14, %16 : vector<2x128xf32>
    %c0_15 = arith.constant 0 : index
    %c0_16 = arith.constant 0 : index
    %18 = vector.load %arg8[%c0_15, %c0_16] : memref<2x128xf32, #tpu.memory_space<vmem>>, vector<2x128xf32>
    tpu.vector_store %arg8[%c0_15, %c0_16], %17 {strides = array<i32>} : memref<2x128xf32, #tpu.memory_space<vmem>>, vector<2x128xf32>,
    return
  }
  func.func @transform_0(%arg0: i32) -> (i32, i32) {
    %c0_i32 = arith.constant 0 : i32
    %c0_i32_0 = arith.constant 0 : i32
    return %c0_i32, %arg0 : i32, i32
  }
  func.func @transform_1(%arg0: i32) -> (i32, i32) {
    %c0_i32 = arith.constant 0 : i32
    %c0_i32_0 = arith.constant 0 : i32
    %c0_i32_1 = arith.constant 0 : i32
    return %c0_i32, %c0_i32_0 : i32, i32
  }
  func.func @transform_2(%arg0: i32) -> (i32, i32) {
    %c0_i32 = arith.constant 0 : i32
    %c0_i32_0 = arith.constant 0 : i32
    %c0_i32_1 = arith.constant 0 : i32
    return %c0_i32, %c0_i32_0 : i32, i32
  }
  func.func @transform_3(%arg0: i32) -> (i32, i32) {
    %c0_i32 = arith.constant 0 : i32
    %c0_i32_0 = arith.constant 0 : i32
    %c0_i32_1 = arith.constant 0 : i32
    return %c0_i32, %c0_i32_0 : i32, i32
  }
  func.func @transform_4(%arg0: i32) -> (i32, i32) {
    %c0_i32 = arith.constant 0 : i32
    %c0_i32_0 = arith.constant 0 : i32
    %c0_i32_1 = arith.constant 0 : i32
    return %c0_i32, %c0_i32_0 : i32, i32
  }
  func.func @transform_5(%arg0: i32) -> (i32, i32) {
    %c0_i32 = arith.constant 0 : i32
    %c0_i32_0 = arith.constant 0 : i32
    %c0_i32_1 = arith.constant 0 : i32
    return %c0_i32, %c0_i32_0 : i32, i32
  }
  func.func @transform_6(%arg0: i32) -> (i32, i32) {
    %c0_i32 = arith.constant 0 : i32
    %c0_i32_0 = arith.constant 0 : i32
    %c0_i32_1 = arith.constant 0 : i32
    return %c0_i32, %c0_i32_0 : i32, i32
  }
  func.func @transform_7(%arg0: i32) -> (i32, i32) {
    %c0_i32 = arith.constant 0 : i32
    %c0_i32_0 = arith.constant 0 : i32
    return %c0_i32, %arg0 : i32, i32
  }
}

</mosaic_0001>

<bundles_post_ra>
// kernel: mein_netz_forward.1
= control target key start
LH: loop header
LB: loop body
LE: loop exit
PB: predicated region body
PF: predicated region fallthrough
CT: control target
= control target key end

     0   :  { %vm65_vm0 = vcmask 1045504   ;;  %v220_v2 = vmov 0   ;;  %vm55_vm1 = vcmask 244736   ;;  %vm116_vm2 = vcmask 195584   ;;  %s322_s0 = inlined_call_operand.vmem [shape: f32[30,128], index: 0, kind: input, shape index: {}]   ;;  %s323_s2 = inlined_call_operand.vmem [shape: f32[24,1], index: 2, kind: input, shape index: {}]   ;;  %s324_s1 = inlined_call_operand.vmem [shape: f32[24,30], index: 1, kind: input, shape index: {}]   ;;  %s325_s4 = inlined_call_operand.vmem [shape: f32[24,1], index: 4, kind: input, shape index: {}]   ;;  %s326_s6 = inlined_call_operand.vmem [shape: f32[2,1], index: 6, kind: input, shape index: {}]   ;;  %s327_s3 = inlined_call_operand.vmem [shape: f32[24,24], index: 3, kind: input, shape index: {}]   ;;  %s328_s5 = inlined_call_operand.vmem [shape: f32[2,24], index: 5, kind: input, shape index: {}]   ;;  %s329_s7 = inlined_call_operand.vmem [shape: f32[2,128], index: 7, kind: output, shape index: {}]  }
   0x1   :  { %v36_v0 = vld [vmem:[%s322_s0 + $0x18] sm:$0x3f]  ;;  %v35_v1 = vld [vmem:[%s322_s0 + $0x10] sm:$0xff]  ;;  %205 = vset.pattern.permute.xlu0 %v220_v2  ;;  %206 = vset.pattern.permute.xlu1 %v220_v2  ;;  %v34_v4 = vld [vmem:[%s322_s0 + $0x8] sm:$0xff] }
   0x2   :  { %197 = vmatpush.msk.msra.mxu3 %vm65_vm0, %v36_v0  ;;  %v39_v3 = vld [vmem:[%s323_s2 + $0x10] sm:$0xff]  ;;  %189 = vmatpush.msk.msra.mxu0 %vm65_vm0, %v36_v0  ;;  %v37_v5 = vld [vmem:[%s323_s2] sm:$0xff]  ;;  %v27_v7 = vld [vmem:[%s324_s1 + $0x8] sm:$0xff] }
   0x3   :  { %52 = vperm.xlu0 %205, %v39_v3   ;;  %207 = vset.pattern.permute.xlu2 %v220_v2  ;;  %v33_v6 = vld [vmem:[%s322_s0] sm:$0xff]  ;;  %v38_v9 = vld [vmem:[%s323_s2 + $0x8] sm:$0xff]  ;;  %v100_v10 = vld [vmem:[%s325_s4 + $0x10] sm:$0xff] }
   0x4   :  { %198 = vmatpush.msra.mxu3 %v35_v1  ;;  %82 = vmatpush.msra.mxu0 %v35_v1  ;;  %v26_v8 = vld [vmem:[%s324_s1] sm:$0xff]  ;;  %v28_v11 = vld [vmem:[%s324_s1 + $0x10] sm:$0xff]  ;;  %v99_v14 = vld [vmem:[%s325_s4 + $0x8] sm:$0xff] }
   0x5   :  { %42 = vperm.xlu1 %206, %v37_v5   ;;  %v155_v12 = vld [vmem:[%s326_s6] sm:$0x3]  ;;  %108 = vperm.xlu2 %207, %v99_v14   ;;  %v31_v28 = vld [vmem:[%s327_s3 + $0x10] sm:$0xff]  ;;  %v30_v29 = vld [vmem:[%s327_s3 + $0x8] sm:$0xff] }
   0x6   :  { %199 = vmatpush.msra.mxu3 %v34_v4  ;;  %83 = vmatpush.msra.mxu0 %v34_v4  ;;  %v98_v17 = vld [vmem:[%s325_s4] sm:$0xff] }
   0x7   :  { %v29_v27 = vld [vmem:[%s327_s3] sm:$0xff] }
   0x8   :  { %200 = vmatpush.msra.mxu3 %v33_v6  ;;  %84 = vmatpush.msra.mxu0 %v33_v6  ;;  %v32_v41 = vld [vmem:[%s328_s5] sm:$0x3] }
   0x9   :  { %191 = vmatmul.msk.f32.vlgmr.msra.gmra.mxu3 %vm55_vm1, %v27_v7  ;;  %190 = vmatmul.msk.f32.vlgmr.msra.gmra.mxu0 %vm55_vm1, %v26_v8 }
   0xb   :  { %47 = vperm.xlu0 %205, %v38_v9  }
   0xd   :  { %113 = vperm.xlu1 %206, %v100_v10   ;;  %103 = vperm.xlu2 %207, %v98_v17  }
  0x11   :  { %192 = vmatmul.msk.f32.gmra.mxu3 %vm55_vm1, %v28_v11 }
  0x13   :  { %158 = vperm.xlu0 %205, %v155_v12  }
  0x5f   :  { %v109_v30 = vpop.permute.xlu2 %108 }
  0x67   :  { %v104_v33 = vpop.permute.xlu2 %103 }
  0x75   :  { %v53_v13 = vpop.permute.xlu0 %52 }
  0x77   :  { %v43_v18 = vpop.permute.xlu1 %42 }
  0x7d   :  { %v48_v19 = vpop.permute.xlu0 %47 }
  0x7f   :  { %v114_v32 = vpop.permute.xlu1 %113 }
  0x85   :  { %v159_v43 = vpop.permute.xlu0 %158 }
  0x86   :  { %v86_v16 = vpop.f32.mrf.mxu0 }
  0x87   :  { %v87_v21 = vadd.f32 %v86_v16, %v43_v18 }
  0x8c   :  { %v89_v15 = vpop.f32.mrf.mxu3 }
  0x8d   :  { %v90_v22 = vadd.f32 %v89_v15, %v48_v19 }
  0x94   :  { %v92_v20 = vpop.f32.mrf.mxu3 }
  0x95   :  { %v93_v23 = vadd.f32 %v92_v20, %v53_v13 }
  0x97   :  { %208 = vtanh.f32 %v93_v23 }
  0x98   :  { %210 = vtanh.f32 %v87_v21 }
  0x99   :  { %212 = vtanh.f32 %v90_v22 }
  0x9d   :  { %v209_v24 = vpop.eup %208 }
  0x9e   :  { %v211_v25 = vpop.eup %210  ;;  %139 = vmatpush.msra.mxu1 %v209_v24  ;;  %201 = vmatpush.msra.mxu2 %v209_v24 }
  0x9f   :  { %v213_v26 = vpop.eup %212 }
  0xa0   :  { %140 = vmatpush.msra.mxu1 %v213_v26  ;;  %202 = vmatpush.msra.mxu2 %v213_v26 }
  0xa2   :  { %141 = vmatpush.msra.mxu1 %v211_v25  ;;  %203 = vmatpush.msra.mxu2 %v211_v25 }
  0xa3   :  { %193 = vmatmul.msk.f32.vlgmr.msra.gmra.mxu1 %vm116_vm2, %v29_v27  ;;  %195 = vmatmul.msk.f32.vlgmr.msra.gmra.mxu2 %vm116_vm2, %v31_v28 }
  0xab   :  { %194 = vmatmul.msk.f32.gmra.mxu1 %vm116_vm2, %v30_v29 }
 0x120   :  { %v143_v31 = vpop.f32.mrf.mxu1 }
 0x121   :  { %v144_v37 = vadd.f32 %v143_v31, %v104_v33 }
 0x126   :  { %v149_v34 = vpop.f32.mrf.mxu2 }
 0x127   :  { %v150_v35 = vadd.f32 %v149_v34, %v114_v32 }
 0x128   :  { %v146_v36 = vpop.f32.mrf.mxu1 }
 0x129   :  { %214 = vtanh.f32 %v150_v35  ;;  %v147_v38 = vadd.f32 %v146_v36, %v109_v30 }
 0x12b   :  { %216 = vtanh.f32 %v147_v38 }
 0x12c   :  { %218 = vtanh.f32 %v144_v37 }
 0x12f   :  { %v215_v39 = vpop.eup %214 }
 0x130   :  { %177 = vmatpush.msrb.mxu2 %v215_v39 }
 0x131   :  { %v217_v40 = vpop.eup %216 }
 0x132   :  { %178 = vmatpush.msrb.mxu2 %v217_v40  ;;  %v219_v42 = vpop.eup %218 }
 0x134   :  { %179 = vmatpush.msrb.mxu2 %v219_v42 }
 0x135   :  { %196 = vmatmul.msk.f32.vlgmr.msrb.gmra.mxu2 %vm116_vm2, %v32_v41 }
 0x1b8   :  { %v181_v44 = vpop.f32.mrf.mxu2 }
 0x1b9   :  { %v182_v45 = vadd.f32 %v181_v44, %v159_v43 }
 0x1bb   :  { %184 = vst [vmem:[%s329_s7] sm:$0x3] %v182_v45 }

</bundles_post_ra>
